<compile_context>
chip_gen: v5e
topology: v5e:2x2
jax: 0.10.0
libtpu: 0.0.40
codegen_flags: <defaults>
</compile_context>

<pallas_src>
import jax
import jax.numpy as jnp
from jax.experimental import pallas as pl
from jax.experimental.pallas import tpu as pltpu


def _round_up(x, m):
    return ((x + m - 1) // m) * m


def gas_model_kernel(ids_ref, attr_ref, w1_ref, b1_ref, wemb_ref, w2f_ref,
                     bf_ref, out_ref):
    """All refs in VMEM.

    ids_ref : (TB, 1)  int32   gas ids for this batch tile
    attr_ref: (TB, A)  f32     gas_attr (unpadded feature dim)
    w1_ref  : (A, Hp)  f32     linear1 weight (pre-transposed)
    b1_ref  : (1, Hp)  f32
    wemb_ref: (Vp, OUTP) f32   embedding table in output cols [:G]
    w2f_ref : (Hp, OUTP) f32   linear2 weight in output cols [G:2G]
    bf_ref  : (1, OUTP) f32    linear2 bias in output cols [G:2G]
    out_ref : (TB, OUTP) f32
    """
    TB = out_ref.shape[0]
    Vp = wemb_ref.shape[0]

    # --- embedding gather as a one-hot matmul operand (single vector load) ---
    ids_col = ids_ref[...]                                           # (TB, 1) int32
    onehot = (jax.lax.broadcasted_iota(jnp.int32, (TB, Vp), 1) == ids_col)
    onehot = onehot.astype(jnp.float32)                              # (TB, Vp)

    # --- NonLinearHead first layer: relu(attr @ w1 + b1) ---
    h = jnp.dot(attr_ref[...], w1_ref[...],
                preferred_element_type=jnp.float32) + b1_ref[...]    # (TB, Hp)
    h = jnp.maximum(h, 0.0)

    # --- gather | linear2 | concat as two matmuls into disjoint output cols ---
    out = (jnp.dot(onehot, wemb_ref[...], preferred_element_type=jnp.float32)
           + jnp.dot(h, w2f_ref[...], preferred_element_type=jnp.float32)
           + bf_ref[...])                                            # (TB, OUTP)
    out_ref[...] = out.astype(out_ref.dtype)         # single lane-dense store


def init_params(key, gas_attr_input_dim, gas_dim, gas_max_count):
    """Logical (unpadded) parameters matching the PyTorch module's shapes."""
    A, G, V = gas_attr_input_dim, gas_dim, gas_max_count
    H = A  # NonLinearHead hidden defaults to input_dim
    k = jax.random.split(key, 5)
    return {
        "embed": jax.random.normal(k[0], (V, G), jnp.float32) * 0.02,
        # PyTorch Linear stores (out, in); we pre-transpose so y = x @ w + b.
        "w1": jax.random.normal(k[1], (A, H), jnp.float32) * 0.1,
        "b1": jax.random.normal(k[2], (1, H), jnp.float32) * 0.1,
        "w2": jax.random.normal(k[3], (H, G), jnp.float32) * 0.1,
        "b2": jax.random.normal(k[4], (1, G), jnp.float32) * 0.1,
    }


def pack_params(params):
    """Pad / lay out the logical params into MXU-tile-aligned operands (once)."""
    embed = params["embed"]               # (V, G)
    w1, b1 = params["w1"], params["b1"]   # (A, H), (1, H)
    w2, b2 = params["w2"], params["b2"]   # (H, G), (1, G)

    V, G = embed.shape
    A, H = w1.shape
    Vp = _round_up(V, 128)
    Hp = _round_up(H, 128)
    OUTP = _round_up(2 * G, 128)

    # First-layer weight: only the hidden dim is padded; attr dim stays A.
    w1p = jnp.zeros((A, Hp), jnp.float32).at[:, :H].set(w1)
    b1p = jnp.zeros((1, Hp), jnp.float32).at[:, :H].set(b1)

    # Embedding table occupies output columns [:G]; linear2 occupies [G:2G].
    w_emb = jnp.zeros((Vp, OUTP), jnp.float32).at[:V, :G].set(embed)
    w2f = jnp.zeros((Hp, OUTP), jnp.float32).at[:H, G:2 * G].set(w2)
    b_f = jnp.zeros((1, OUTP), jnp.float32).at[:, G:2 * G].set(b2)

    return {"w1": w1p, "b1": b1p, "w_emb": w_emb, "w2f": w2f, "b_f": b_f,
            "out_dim": 2 * G, "attr_dim": A}


def gas_model_forward(gas, gas_attr, packed):
    """gas: (B,) int, gas_attr: (B, A) any float -> (B, 2*gas_dim) float32."""
    w1p, b1p = packed["w1"], packed["b1"]
    wemb, w2f, bf = packed["w_emb"], packed["w2f"], packed["b_f"]
    A, Hp = w1p.shape
    OUTP = wemb.shape[1]
    out_dim = packed["out_dim"]

    B = gas.shape[0]
    if B <= 128:
        # Whole (padded) batch in one block.
        TB = _round_up(B, 8)
        Bp = TB
    else:
        # Large tiles to amortize per-step overhead; >= 2 "parallel" grid steps
        # so v7x's two TensorCores both get work (v5e/v6e unaffected).
        TB = min(512, _round_up((B + 1) // 2, 128))
        Bp = _round_up(B, TB)

    ids = jnp.zeros((Bp, 1), jnp.int32).at[:B, 0].set(gas.astype(jnp.int32))   # .long()
    attr = jnp.zeros((Bp, A), jnp.float32).at[:B, :].set(
        gas_attr.astype(jnp.float32))                                           # .type_as(w1)

    grid_spec = pltpu.PrefetchScalarGridSpec(
        num_scalar_prefetch=0,
        grid=(Bp // TB,),
        in_specs=[
            pl.BlockSpec((TB, 1), lambda b: (b, 0)),        # gas ids block
            pl.BlockSpec((TB, A), lambda b: (b, 0)),        # gas_attr block (A=8, full dim)
            pl.BlockSpec((A, Hp), lambda b: (0, 0)),        # w1 (resident)
            pl.BlockSpec((1, Hp), lambda b: (0, 0)),        # b1
            pl.BlockSpec(wemb.shape, lambda b: (0, 0)),     # embedding table (resident)
            pl.BlockSpec(w2f.shape, lambda b: (0, 0)),      # linear2 weight (resident)
            pl.BlockSpec((1, OUTP), lambda b: (0, 0)),      # linear2 bias
        ],
        out_specs=pl.BlockSpec((TB, OUTP), lambda b: (b, 0)),
    )
    out_padded = pl.pallas_call(
        gas_model_kernel,
        out_shape=jax.ShapeDtypeStruct((Bp, OUTP), jnp.float32),
        grid_spec=grid_spec,
        compiler_params=pltpu.CompilerParams(dimension_semantics=("parallel",)),
    )(ids, attr, w1p, b1p, wemb, w2f, bf)

    # Strip batch / lane padding: real output lives in the first 2G columns.
    return out_padded[:B, :out_dim]


def reference_forward(gas, gas_attr, params):
    """Pure-JAX reference mirroring the PyTorch forward."""
    gas = gas.astype(jnp.int32)
    gas_attr = gas_attr.astype(jnp.float32)
    gas_embed = params["embed"][gas]                                     # (B, G)
    h = jnp.maximum(gas_attr @ params["w1"] + params["b1"], 0.0)
    attr_embed = h @ params["w2"] + params["b2"]
    return jnp.concatenate([gas_embed, attr_embed], axis=-1)


if __name__ == "__main__":
    # small shapes consistent with the module
    A = 8        # gas_attr_input_dim
    G = 32       # gas_dim
    V = 500      # gas_max_count (module default; padded to 512 inside pack_params)

    key = jax.random.PRNGKey(0)
    k_gas, k_attr, k_par, k_gas2, k_attr2 = jax.random.split(key, 5)
    params = init_params(k_par, A, G, V)
    packed = pack_params(params)

    # --- single-block path (B <= 128) ---
    B = 4
    gas = jax.random.randint(k_gas, (B,), 0, V, dtype=jnp.int32)
    gas_attr = jax.random.normal(k_attr, (B, A), jnp.float32)
    out = jax.block_until_ready(gas_model_forward(gas, gas_attr, packed))
    ref = reference_forward(gas, gas_attr, params)
    assert out.shape == (B, 2 * G), out.shape
    assert jnp.allclose(out, ref, rtol=1e-2, atol=1e-2), "mismatch vs reference (small B)"

    # --- gridded path (B > 128, multiple parallel tiles) ---
    B2 = 260
    gas2 = jax.random.randint(k_gas2, (B2,), 0, V, dtype=jnp.int32)
    gas_attr2 = jax.random.normal(k_attr2, (B2, A), jnp.float32)
    out2 = jax.block_until_ready(gas_model_forward(gas2, gas_attr2, packed))
    ref2 = reference_forward(gas2, gas_attr2, params)
    assert out2.shape == (B2, 2 * G), out2.shape
    assert jnp.allclose(out2, ref2, rtol=1e-2, atol=1e-2), "mismatch vs reference (large B)"

    # TODO(synk): out-of-range gas ids silently produce a zero embedding row
    # (nn.Embedding would raise); acceptable only if ids are guaranteed in range.
    print("KERNEL_OK")
</pallas_src>

<mosaic_0001>
module attributes {stable_mosaic.version = 11 : i64} {
  func.func @gas_model_kernel(%arg0: i32, %arg1: memref<8x1xi32, #tpu.memory_space<vmem>>, %arg2: memref<8x8xf32, #tpu.memory_space<vmem>>, %arg3: memref<8x128xf32, #tpu.memory_space<vmem>>, %arg4: memref<1x128xf32, #tpu.memory_space<vmem>>, %arg5: memref<512x128xf32, #tpu.memory_space<vmem>>, %arg6: memref<128x128xf32, #tpu.memory_space<vmem>>, %arg7: memref<1x128xf32, #tpu.memory_space<vmem>>, %arg8: memref<8x128xf32, #tpu.memory_space<vmem>>) attributes {dimension_semantics = [#tpu.dimension_semantics<parallel>], iteration_bounds = array<i64: 1>, scalar_prefetch = 0 : i64, scratch_operands = 0 : i64, tpu.core_type = #tpu.core_type<tc>, window_params = [{transform_indices = @transform_0, window_bounds = array<i64: 8, 1>}, {transform_indices = @transform_1, window_bounds = array<i64: 8, 8>}, {pipeline_mode = #tpu.pipeline_mode<synchronous>, transform_indices = @transform_2, window_bounds = array<i64: 8, 128>}, {pipeline_mode = #tpu.pipeline_mode<synchronous>, transform_indices = @transform_3, window_bounds = array<i64: 1, 128>}, {pipeline_mode = #tpu.pipeline_mode<synchronous>, transform_indices = @transform_4, window_bounds = array<i64: 512, 128>}, {pipeline_mode = #tpu.pipeline_mode<synchronous>, transform_indices = @transform_5, window_bounds = array<i64: 128, 128>}, {pipeline_mode = #tpu.pipeline_mode<synchronous>, transform_indices = @transform_6, window_bounds = array<i64: 1, 128>}, {transform_indices = @transform_7, window_bounds = array<i64: 8, 128>}]} {
    %c0 = arith.constant 0 : index
    %c0_0 = arith.constant 0 : index
    %0 = vector.load %arg1[%c0, %c0_0] : memref<8x1xi32, #tpu.memory_space<vmem>>, vector<8x1xi32>
    %1 = tpu.iota {dimensions = array<i32: 1>} : vector<8x512xi32>
    %2 = vector.broadcast %0 : vector<8x1xi32> to vector<8x512xi32>
    %3 = arith.cmpi eq, %1, %2 : vector<8x512xi32>
    %4 = arith.extui %3 : vector<8x512xi1> to vector<8x512xi32>
    %5 = arith.sitofp %4 : vector<8x512xi32> to vector<8x512xf32>
    %c0_1 = arith.constant 0 : index
    %c0_2 = arith.constant 0 : index
    %6 = vector.load %arg2[%c0_1, %c0_2] : memref<8x8xf32, #tpu.memory_space<vmem>>, vector<8x8xf32>
    %c0_3 = arith.constant 0 : index
    %c0_4 = arith.constant 0 : index
    %7 = vector.load %arg3[%c0_3, %c0_4] : memref<8x128xf32, #tpu.memory_space<vmem>>, vector<8x128xf32>
    %cst = arith.constant dense<0.000000e+00> : vector<8x128xf32>
    %8 = tpu.matmul %6, %7, %cst {dimension_numbers = #tpu.dot_dimension_numbers<[1], [0], [0], [1], [0, 0, 1, 1], [], []>} : vector<8x8xf32>, vector<8x128xf32>, vector<8x128xf32> -> vector<8x128xf32>
    %c0_5 = arith.constant 0 : index
    %c0_6 = arith.constant 0 : index
    %9 = vector.load %arg4[%c0_5, %c0_6] : memref<1x128xf32, #tpu.memory_space<vmem>>, vector<1x128xf32>
    %10 = vector.broadcast %9 : vector<1x128xf32> to vector<8x128xf32>
    %11 = arith.addf %8, %10 : vector<8x128xf32>
    %cst_7 = arith.constant 0.000000e+00 : f32
    %12 = vector.broadcast %cst_7 : f32 to vector<8x128xf32>
    %13 = arith.maximumf %11, %12 : vector<8x128xf32>
    %c0_8 = arith.constant 0 : index
    %c0_9 = arith.constant 0 : index
    %14 = vector.load %arg5[%c0_8, %c0_9] : memref<512x128xf32, #tpu.memory_space<vmem>>, vector<512x128xf32>
    %cst_10 = arith.constant dense<0.000000e+00> : vector<8x128xf32>
    %15 = tpu.matmul %5, %14, %cst_10 {dimension_numbers = #tpu.dot_dimension_numbers<[1], [0], [0], [1], [0, 0, 1, 1], [], []>} : vector<8x512xf32>, vector<512x128xf32>, vector<8x128xf32> -> vector<8x128xf32>
    %c0_11 = arith.constant 0 : index
    %c0_12 = arith.constant 0 : index
    %16 = vector.load %arg6[%c0_11, %c0_12] : memref<128x128xf32, #tpu.memory_space<vmem>>, vector<128x128xf32>
    %cst_13 = arith.constant dense<0.000000e+00> : vector<8x128xf32>
    %17 = tpu.matmul %13, %16, %cst_13 {dimension_numbers = #tpu.dot_dimension_numbers<[1], [0], [0], [1], [0, 0, 1, 1], [], []>} : vector<8x128xf32>, vector<128x128xf32>, vector<8x128xf32> -> vector<8x128xf32>
    %18 = arith.addf %15, %17 : vector<8x128xf32>
    %c0_14 = arith.constant 0 : index
    %c0_15 = arith.constant 0 : index
    %19 = vector.load %arg7[%c0_14, %c0_15] : memref<1x128xf32, #tpu.memory_space<vmem>>, vector<1x128xf32>
    %20 = vector.broadcast %19 : vector<1x128xf32> to vector<8x128xf32>
    %21 = arith.addf %18, %20 : vector<8x128xf32>
    %c0_16 = arith.constant 0 : index
    %c0_17 = arith.constant 0 : index
    %22 = vector.load %arg8[%c0_16, %c0_17] : memref<8x128xf32, #tpu.memory_space<vmem>>, vector<8x128xf32>
    tpu.vector_store %arg8[%c0_16, %c0_17], %21 {strides = array<i32>} : memref<8x128xf32, #tpu.memory_space<vmem>>, vector<8x128xf32>,
    return
  }
  func.func @transform_0(%arg0: i32) -> (i32, i32) {
    %c0_i32 = arith.constant 0 : i32
    %c0_i32_0 = arith.constant 0 : i32
    return %arg0, %c0_i32 : i32, i32
  }
  func.func @transform_1(%arg0: i32) -> (i32, i32) {
    %c0_i32 = arith.constant 0 : i32
    %c0_i32_0 = arith.constant 0 : i32
    return %arg0, %c0_i32 : i32, i32
  }
  func.func @transform_2(%arg0: i32) -> (i32, i32) {
    %c0_i32 = arith.constant 0 : i32
    %c0_i32_0 = arith.constant 0 : i32
    %c0_i32_1 = arith.constant 0 : i32
    return %c0_i32, %c0_i32_0 : i32, i32
  }
  func.func @transform_3(%arg0: i32) -> (i32, i32) {
    %c0_i32 = arith.constant 0 : i32
    %c0_i32_0 = arith.constant 0 : i32
    %c0_i32_1 = arith.constant 0 : i32
    return %c0_i32, %c0_i32_0 : i32, i32
  }
  func.func @transform_4(%arg0: i32) -> (i32, i32) {
    %c0_i32 = arith.constant 0 : i32
    %c0_i32_0 = arith.constant 0 : i32
    %c0_i32_1 = arith.constant 0 : i32
    return %c0_i32, %c0_i32_0 : i32, i32
  }
  func.func @transform_5(%arg0: i32) -> (i32, i32) {
    %c0_i32 = arith.constant 0 : i32
    %c0_i32_0 = arith.constant 0 : i32
    %c0_i32_1 = arith.constant 0 : i32
    return %c0_i32, %c0_i32_0 : i32, i32
  }
  func.func @transform_6(%arg0: i32) -> (i32, i32) {
    %c0_i32 = arith.constant 0 : i32
    %c0_i32_0 = arith.constant 0 : i32
    %c0_i32_1 = arith.constant 0 : i32
    return %c0_i32, %c0_i32_0 : i32, i32
  }
  func.func @transform_7(%arg0: i32) -> (i32, i32) {
    %c0_i32 = arith.constant 0 : i32
    %c0_i32_0 = arith.constant 0 : i32
    return %arg0, %c0_i32 : i32, i32
  }
}

</mosaic_0001>

<bundles_post_ra>
// kernel: tpu_custom_call.1
= control target key start
LH: loop header
LB: loop body
LE: loop exit
PB: predicated region body
PF: predicated region fallthrough
CT: control target
= control target key end

     0   :  { %12 = vsyncpa [#allocation3], 0  ;;  %s522_s0 = inlined_call_operand.vmem [shape: s32[8,1], index: 0, kind: input, shape index: {}]   ;;  %s523_s1 = inlined_call_operand.vmem [shape: f32[8,8], index: 1, kind: input, shape index: {}]   ;;  %s524_s2 = inlined_call_operand.hbm [shape: f32[8,128], index: 2, kind: input, shape index: {}]   ;;  %s525_s3 = inlined_call_operand.vmem [shape: f32[1,128], index: 3, kind: input, shape index: {}]   ;;  %s526_s4 = inlined_call_operand.hbm [shape: f32[512,128], index: 4, kind: input, shape index: {}]   ;;  %s527_s5 = inlined_call_operand.hbm [shape: f32[128,128], index: 5, kind: input, shape index: {}]   ;;  %s528_s6 = inlined_call_operand.vmem [shape: f32[1,128], index: 6, kind: input, shape index: {}]   ;;  %s529_s7 = inlined_call_operand.hbm [shape: f32[8,128], index: 7, kind: output, shape index: {}]  }
   0x1   :  { %13 = vsyncpa [#allocation6], 0  ;;  %s36_s26 = sshll.u32 %s526_s4, 4  ;;  %s37_s26 = int_to_ptr.hbm [resolvable:$true] %s36_s26 }
   0x2   :  { %14 = vsyncpa [#allocation4], 0  ;;  %s450_s27 = smov [#allocation5]   ;;  %s24_s8 = sshll.u32 %s524_s2, 4  ;;  %s25_s8 = int_to_ptr.hbm [resolvable:$true] %s24_s8 }
   0x3   :  { %s38_s28 = sshll.u32 %s450_s27, 4  ;;  %s451_s9 = smov 128   ;;  %s39_s28 = int_to_ptr.vmem [resolvable:$true] %s38_s28 }
   0x4   :  { %s452_s10 = smov 8   ;;  %s453_s11 = smov [#allocation2]  }
   0x5   :  { %44 = dma.hbm_to_vmem [thread:$0]  %s37_s26, 8192, %s39_s28, [#allocation6], %s451_s9, %s451_s9, %s452_s10  }
   0x6   :  { %s26_s12 = sshll.u32 %s453_s11, 4  ;;  %s49_s15 = sshll.u32 %s527_s5, 4  ;;  %s27_s12 = int_to_ptr.vmem [resolvable:$true] %s26_s12  ;;  %s50_s15 = int_to_ptr.hbm [resolvable:$true] %s49_s15 }
   0x7   :  { %29 = dma.hbm_to_vmem [thread:$0]  %s25_s8, 128, %s27_s12, [#allocation3]  }
   0x8   :  { %s454_s4 = smov [#allocation7]  }
   0x9   :  { %s51_s16 = sshll.u32 %s454_s4, 4  ;;  %s52_s16 = int_to_ptr.vmem [resolvable:$true] %s51_s16 }
   0xa   :  { %57 = dma.hbm_to_vmem [thread:$0]  %s50_s15, 2048, %s52_s16, [#allocation6], %s451_s9, %s451_s9, %s452_s10  }
   0xb   :  { %444 = dma.done.wait [#allocation3], 128  }
   0xc   :  { %445 = vsyncadd [#allocation3], 4294967168 }
   0xd   :  { %446 = dma.done.wait [#allocation6], 10240  }
   0xe   :  { %447 = vsyncadd [#allocation6], 4294957056  ;;  %v455_v0 = vmov 0   ;;  %vm99_vm0 = vcmask 64512   ;;  %v94_v1 = vld [vmem:[#allocation2] sm:$0xff]  ;;  %v202_v5 = vld [vmem:[#allocation7 + $0x70] sm:$0xff] }
   0xf   :  { %345 = vset.pattern.permute.xlu0 %v455_v0  ;;  %v93_v2 = vld [vmem:[%s523_s1] sm:$0xff]  ;;  %118 = vmatpush.msra.mxu0 %v94_v1  ;;  %v201_v6 = vld [vmem:[#allocation7 + $0x68] sm:$0xff]  ;;  %v138_v8 = vld [vmem:[#allocation5 + $0x70] sm:$0xff]  ;;  %s317_s24 = sshll.u32 %s529_s7, 4  ;;  %s318_s24 = int_to_ptr.hbm [resolvable:$true] %s317_s24 }
  0x10   :  { %v72_v3 = vld [vmem:[%s522_s0] sm:$0xff]  ;;  %332 = vmatmul.msk.f32.vlgmr.msra.gmra.mxu0 %vm99_vm0, %v93_v2  ;;  %v200_v9 = vld [vmem:[#allocation7 + $0x60] sm:$0xff]  ;;  %v137_v12 = vld [vmem:[#allocation5 + $0x68] sm:$0xff] }
  0x11   :  { %79 = vperm.xlu0 %345, %v72_v3   ;;  %v203_v4 = vld [vmem:[#allocation7 + $0x78] sm:$0xff]  ;;  %v154_v13 = vld [vmem:[#allocation5 + $0xf0] sm:$0xff]  ;;  %v153_v16 = vld [vmem:[#allocation5 + $0xe8] sm:$0xff] }
  0x12   :  { %204 = vmatpush.msra.mxu1 %v203_v4  ;;  %v139_v7 = vld [vmem:[#allocation5 + $0x78] sm:$0xff]  ;;  %v170_v14 = vld [vmem:[#allocation5 + $0x170] sm:$0xff]  ;;  %v136_v17 = vld [vmem:[#allocation5 + $0x60] sm:$0xff] }
  0x13   :  { %224 = vmatpush.msra.mxu2 %v139_v7  ;;  %v155_v10 = vld [vmem:[#allocation5 + $0xf8] sm:$0xff]  ;;  %v169_v18 = vld [vmem:[#allocation5 + $0x168] sm:$0xff]  ;;  %v198_v19 = vld [vmem:[#allocation7 + $0x50] sm:$0xff] }
  0x14   :  { %205 = vmatpush.msra.mxu1 %v202_v5  ;;  %v171_v11 = vld [vmem:[#allocation5 + $0x178] sm:$0xff]  ;;  %244 = vmatpush.msra.mxu3 %v155_v10  ;;  %v152_v20 = vld [vmem:[#allocation5 + $0xe0] sm:$0xff]  ;;  %v197_v23 = vld [vmem:[#allocation7 + $0x48] sm:$0xff] }
  0x15   :  { %v199_v15 = vld [vmem:[#allocation7 + $0x58] sm:$0xff]  ;;  %225 = vmatpush.msra.mxu2 %v138_v8  ;;  %264 = vmatpush.msrb.mxu0 %v171_v11  ;;  %v168_v22 = vld [vmem:[#allocation5 + $0x160] sm:$0xff]  ;;  %v134_v25 = vld [vmem:[#allocation5 + $0x50] sm:$0xff] }
  0x16   :  { %206 = vmatpush.msra.mxu1 %v201_v6  ;;  %245 = vmatpush.msra.mxu3 %v154_v13  ;;  %v135_v21 = vld [vmem:[#allocation5 + $0x58] sm:$0xff]  ;;  %v196_v27 = vld [vmem:[#allocation7 + $0x40] sm:$0xff]  ;;  %v150_v28 = vld [vmem:[#allocation5 + $0xd0] sm:$0xff] }
  0x17   :  { %226 = vmatpush.msra.mxu2 %v137_v12  ;;  %265 = vmatpush.msrb.mxu0 %v170_v14  ;;  %v151_v24 = vld [vmem:[#allocation5 + $0xd8] sm:$0xff]  ;;  %v133_v29 = vld [vmem:[#allocation5 + $0x48] sm:$0xff]  ;;  %v166_v30 = vld [vmem:[#allocation5 + $0x150] sm:$0xff] }
  0x18   :  { %207 = vmatpush.msra.mxu1 %v200_v9  ;;  %246 = vmatpush.msra.mxu3 %v153_v16  ;;  %v167_v26 = vld [vmem:[#allocation5 + $0x158] sm:$0xff]  ;;  %v149_v32 = vld [vmem:[#allocation5 + $0xc8] sm:$0xff]  ;;  %v132_v33 = vld [vmem:[#allocation5 + $0x40] sm:$0xff] }
  0x19   :  { %227 = vmatpush.msra.mxu2 %v136_v17  ;;  %266 = vmatpush.msrb.mxu0 %v169_v18  ;;  %v195_v31 = vld [vmem:[#allocation7 + $0x38] sm:$0xff]  ;;  %v165_v34 = vld [vmem:[#allocation5 + $0x148] sm:$0xff]  ;;  %v194_v35 = vld [vmem:[#allocation7 + $0x30] sm:$0xff] }
  0x1a   :  { %208 = vmatpush.msra.mxu1 %v199_v15  ;;  %247 = vmatpush.msra.mxu3 %v152_v20  ;;  %v148_v36 = vld [vmem:[#allocation5 + $0xc0] sm:$0xff]  ;;  %v131_v37 = vld [vmem:[#allocation5 + $0x38] sm:$0xff]  ;;  %v193_v39 = vld [vmem:[#allocation7 + $0x28] sm:$0xff] }
  0x1b   :  { %228 = vmatpush.msra.mxu2 %v135_v21  ;;  %267 = vmatpush.msrb.mxu0 %v168_v22  ;;  %v164_v38 = vld [vmem:[#allocation5 + $0x140] sm:$0xff]  ;;  %v147_v40 = vld [vmem:[#allocation5 + $0xb8] sm:$0xff]  ;;  %v130_v41 = vld [vmem:[#allocation5 + $0x30] sm:$0xff] }
  0x1c   :  { %209 = vmatpush.msra.mxu1 %v198_v19  ;;  %248 = vmatpush.msra.mxu3 %v151_v24  ;;  %v163_v42 = vld [vmem:[#allocation5 + $0x138] sm:$0xff]  ;;  %v192_v43 = vld [vmem:[#allocation7 + $0x20] sm:$0xff]  ;;  %v146_v44 = vld [vmem:[#allocation5 + $0xb0] sm:$0xff]  ;;  %v73_v19 = vlaneseq }
  0x1d   :  { %229 = vmatpush.msra.mxu2 %v134_v25  ;;  %268 = vmatpush.msrb.mxu0 %v167_v26  ;;  %v191_v45 = vld [vmem:[#allocation7 + $0x18] sm:$0xff]  ;;  %v129_v46 = vld [vmem:[#allocation5 + $0x28] sm:$0xff]  ;;  %v162_v47 = vld [vmem:[#allocation5 + $0x130] sm:$0xff]  ;;  %v456_v25 = vmov 1.0  }
  0x1e   :  { %210 = vmatpush.msra.mxu1 %v197_v23  ;;  %249 = vmatpush.msra.mxu3 %v150_v28  ;;  %v145_v48 = vld [vmem:[#allocation5 + $0xa8] sm:$0xff]  ;;  %v128_v49 = vld [vmem:[#allocation5 + $0x20] sm:$0xff]  ;;  %v190_v51 = vld [vmem:[#allocation7 + $0x10] sm:$0xff]  ;;  %v74_v21 = vand.u32 127, %v73_v19 }
  0x1f   :  { %230 = vmatpush.msra.mxu2 %v133_v29  ;;  %269 = vmatpush.msrb.mxu0 %v166_v30  ;;  %v161_v50 = vld [vmem:[#allocation5 + $0x128] sm:$0xff]  ;;  %v144_v52 = vld [vmem:[#allocation5 + $0xa0] sm:$0xff]  ;;  %v127_v53 = vld [vmem:[#allocation5 + $0x18] sm:$0xff] }
  0x20   :  { %211 = vmatpush.msra.mxu1 %v196_v27  ;;  %250 = vmatpush.msra.mxu3 %v149_v32  ;;  %v160_v54 = vld [vmem:[#allocation5 + $0x120] sm:$0xff]  ;;  %v189_v55 = vld [vmem:[#allocation7 + $0x8] sm:$0xff]  ;;  %v143_v56 = vld [vmem:[#allocation5 + $0x98] sm:$0xff]  ;;  %v75_v22 = vadd.s32 128, %v74_v21  ;;  %v76_v23 = vadd.s32 256, %v74_v21  ;;  %v77_v30 = vadd.s32 384, %v74_v21 }
  0x21   :  { %231 = vmatpush.msra.mxu2 %v132_v33  ;;  %270 = vmatpush.msrb.mxu0 %v165_v34  ;;  %v126_v57 = vld [vmem:[#allocation5 + $0x10] sm:$0xff]  ;;  %v159_v58 = vld [vmem:[#allocation5 + $0x118] sm:$0xff]  ;;  %v188_v59 = vld [vmem:[#allocation7] sm:$0xff] }
  0x22   :  { %212 = vmatpush.msra.mxu1 %v195_v31  ;;  %251 = vmatpush.msra.mxu3 %v148_v36  ;;  %v142_v60 = vld [vmem:[#allocation5 + $0x90] sm:$0xff]  ;;  %v187_v61 = vld [vmem:[#allocation5 + $0x1f8] sm:$0xff]  ;;  %v125_v62 = vld [vmem:[#allocation5 + $0x8] sm:$0xff] }
  0x23   :  { %232 = vmatpush.msra.mxu2 %v131_v37  ;;  %271 = vmatpush.msrb.mxu0 %v164_v38  ;;  %v158_v63 = vld [vmem:[#allocation5 + $0x110] sm:$0xff]  ;;  %v185_v1 = vld [vmem:[#allocation5 + $0x1e8] sm:$0xff]  ;;  %v184_v2 = vld [vmem:[#allocation5 + $0x1e0] sm:$0xff] }
  0x24   :  { %213 = vmatpush.msra.mxu1 %v194_v35  ;;  %252 = vmatpush.msra.mxu3 %v147_v40  ;;  %v186_v0 = vld [vmem:[#allocation5 + $0x1f0] sm:$0xff]  ;;  %v183_v3 = vld [vmem:[#allocation5 + $0x1d8] sm:$0xff]  ;;  %v181_v5 = vld [vmem:[#allocation5 + $0x1c8] sm:$0xff] }
  0x25   :  { %233 = vmatpush.msra.mxu2 %v130_v41  ;;  %272 = vmatpush.msrb.mxu0 %v163_v42  ;;  %v182_v4 = vld [vmem:[#allocation5 + $0x1d0] sm:$0xff]  ;;  %v180_v6 = vld [vmem:[#allocation5 + $0x1c0] sm:$0xff]  ;;  %v141_v8 = vld [vmem:[#allocation5 + $0x88] sm:$0xff] }
  0x26   :  { %214 = vmatpush.msra.mxu1 %v193_v39  ;;  %253 = vmatpush.msra.mxu3 %v146_v44  ;;  %v124_v7 = vld [vmem:[#allocation5] sm:$0xff]  ;;  %v157_v9 = vld [vmem:[#allocation5 + $0x108] sm:$0xff]  ;;  %v179_v10 = vld [vmem:[#allocation5 + $0x1b8] sm:$0xff] }
  0x27   :  { %234 = vmatpush.msra.mxu2 %v129_v46  ;;  %273 = vmatpush.msrb.mxu0 %v162_v47  ;;  %v140_v11 = vld [vmem:[#allocation5 + $0x80] sm:$0xff]  ;;  %v178_v13 = vld [vmem:[#allocation5 + $0x1b0] sm:$0xff]  ;;  %v177_v14 = vld [vmem:[#allocation5 + $0x1a8] sm:$0xff] }
  0x28   :  { %215 = vmatpush.msra.mxu1 %v192_v43  ;;  %254 = vmatpush.msra.mxu3 %v145_v48  ;;  %v156_v12 = vld [vmem:[#allocation5 + $0x100] sm:$0xff]  ;;  %v175_v16 = vld [vmem:[#allocation5 + $0x198] sm:$0xff]  ;;  %v174_v17 = vld [vmem:[#allocation5 + $0x190] sm:$0xff] }
  0x29   :  { %235 = vmatpush.msra.mxu2 %v128_v49  ;;  %274 = vmatpush.msrb.mxu0 %v161_v50  ;;  %v176_v15 = vld [vmem:[#allocation5 + $0x1a0] sm:$0xff]  ;;  %v173_v18 = vld [vmem:[#allocation5 + $0x188] sm:$0xff]  ;;  %v346_v26 = vld [vmem:[%s525_s3] ss:$0 sm:$0xff]  ;;  %s457_s3 = smov [#allocation8]  }
  0x2a   :  { %216 = vmatpush.msra.mxu1 %v191_v45  ;;  %255 = vmatpush.msra.mxu3 %v144_v52  ;;  %v172_v20 = vld [vmem:[#allocation5 + $0x180] sm:$0xff]  ;;  %v347_v38 = vld [vmem:[%s528_s6] ss:$0 sm:$0xff]  ;;  %s315_s21 = sshll.u32 %s457_s3, 4  ;;  %s316_s21 = int_to_ptr.vmem [resolvable:$true] %s315_s21 }
  0x2b   :  { %236 = vmatpush.msra.mxu2 %v127_v53  ;;  %275 = vmatpush.msrb.mxu0 %v160_v54 }
  0x2c   :  { %217 = vmatpush.msra.mxu1 %v190_v51  ;;  %256 = vmatpush.msra.mxu3 %v143_v56 }
  0x2d   :  { %237 = vmatpush.msra.mxu2 %v126_v57  ;;  %276 = vmatpush.msrb.mxu0 %v159_v58 }
  0x2e   :  { %218 = vmatpush.msra.mxu1 %v189_v55  ;;  %257 = vmatpush.msra.mxu3 %v142_v60 }
  0x2f   :  { %238 = vmatpush.msra.mxu2 %v125_v62  ;;  %277 = vmatpush.msrb.mxu0 %v158_v63 }
  0x30   :  { %219 = vmatpush.msra.mxu1 %v188_v59  ;;  %258 = vmatpush.msra.mxu3 %v141_v8 }
  0x31   :  { %239 = vmatpush.msra.mxu2 %v124_v7  ;;  %278 = vmatpush.msrb.mxu0 %v157_v9 }
  0x32   :  { %284 = vmatpush.msrb.mxu1 %v187_v61  ;;  %259 = vmatpush.msra.mxu3 %v140_v11 }
  0x33   :  { %279 = vmatpush.msrb.mxu0 %v156_v12 }
  0x34   :  { %285 = vmatpush.msrb.mxu1 %v186_v0 }
  0x36   :  { %286 = vmatpush.msrb.mxu1 %v185_v1 }
  0x38   :  { %287 = vmatpush.msrb.mxu1 %v184_v2 }
  0x3a   :  { %288 = vmatpush.msrb.mxu1 %v183_v3 }
  0x3c   :  { %289 = vmatpush.msrb.mxu1 %v182_v4 }
  0x3e   :  { %290 = vmatpush.msrb.mxu1 %v181_v5 }
  0x40   :  { %291 = vmatpush.msrb.mxu1 %v180_v6 }
  0x42   :  { %292 = vmatpush.msrb.mxu1 %v179_v10 }
  0x44   :  { %293 = vmatpush.msrb.mxu1 %v178_v13 }
  0x46   :  { %294 = vmatpush.msrb.mxu1 %v177_v14 }
  0x48   :  { %295 = vmatpush.msrb.mxu1 %v176_v15 }
  0x4a   :  { %296 = vmatpush.msrb.mxu1 %v175_v16 }
  0x4c   :  { %297 = vmatpush.msrb.mxu1 %v174_v17 }
  0x4e   :  { %298 = vmatpush.msrb.mxu1 %v173_v18 }
  0x50   :  { %299 = vmatpush.msrb.mxu1 %v172_v20 }
  0x83   :  { %v80_v24 = vpop.permute.xlu0 %79 }
  0x84   :  { %vm81_vm1 = vcmp.eq.s32.totalorder %v74_v21, %v80_v24  ;;  %vm82_vm2 = vcmp.eq.s32.totalorder %v75_v22, %v80_v24  ;;  %vm83_vm3 = vcmp.eq.s32.totalorder %v76_v23, %v80_v24  ;;  %vm84_vm4 = vcmp.eq.s32.totalorder %v77_v30, %v80_v24 }
  0x85   :  { %333 = vmatmul.msk.f32.vlgmr.msra.gmra.mxu2 %vm81_vm1, %v456_v25  ;;  %334 = vmatmul.msk.f32.vlgmr.msra.gmra.mxu3 %vm82_vm2, %v456_v25 }
  0x86   :  { %335 = vmatmul.msk.f32.vlgmr.msrb.gmra.mxu0 %vm83_vm3, %v456_v25 }
  0x8d   :  { %v120_v27 = vpop.f32.mrf.mxu0 }
  0x8e   :  { %v121_v28 = vadd.f32 %v346_v26, %v120_v27 }
  0x90   :  { %v123_v29 = vmax.f32 %v121_v28, 0.0 }
  0x92   :  { %220 = vmatmul.f32.vlgmr.msra.gmra.mxu1 %v123_v29 }
  0x9a   :  { %336 = vmatmul.msk.f32.vlgmr.msrb.gmra.mxu1 %vm84_vm4, %v456_v25 }
 0x103   :  { %v281_v36 = vpop.f32.mrf.mxu0 }
 0x108   :  { %v241_v31 = vpop.f32.mrf.mxu2  ;;  %v261_v33 = vpop.f32.mrf.mxu3 }
 0x10f   :  { %v221_v32 = vpop.f32.mrf.mxu1 }
 0x110   :  { %v242_v34 = vadd.f32 %v241_v31, %v221_v32 }
 0x112   :  { %v262_v35 = vadd.f32 %v261_v33, %v242_v34 }
 0x114   :  { %v282_v37 = vadd.f32 %v281_v36, %v262_v35 }
 0x117   :  { %v301_v39 = vpop.f32.mrf.mxu1 }
 0x118   :  { %v302_v40 = vadd.f32 %v301_v39, %v282_v37 }
 0x11a   :  { %v308_v41 = vadd.f32 %v347_v38, %v302_v40 }
 0x11c   :  { %309 = vst [vmem:[#allocation8] sm:$0xff] %v308_v41 }
 0x11d   :  { %320 = dma.vmem_to_hbm [thread:$0]  %s316_s21, 128, %s318_s24, [#allocation4]  }
 0x11e   :  { %448 = dma.done.wait [#allocation4], 128  }
 0x11f   :  { %449 = vsyncadd [#allocation4], 4294967168 }
 0x120   :  { %325 = vsyncpa [#allocation3], 1 }
 0x121   :  { %326 = vsyncpa [#allocation6], 1 }
 0x122   :  { %327 = vsyncpa [#allocation4], 1 }

</bundles_post_ra>
